<compile_context>
chip_gen: v7x
topology: tpu7x:2x2x1
jax: 0.10.0
libtpu: 0.0.40
codegen_flags: <defaults>
</compile_context>

<pallas_src>
import functools

import jax
import jax.numpy as jnp
from jax.experimental import pallas as pl
from jax.experimental.pallas import tpu as pltpu


def _mlp_kernel(x_ref, w1_ref, b1_ref, w2_ref, b2_ref,
                w3_ref, b3_ref, w4_ref, b4_ref, o_ref):
    # In-kernel bf16 cast of the activation tile (near-free VPU pack); the
    # MXU matmuls accumulate in f32.
    x = x_ref[...].astype(jnp.bfloat16)
    # fc1 + relu
    h = jnp.dot(x, w1_ref[...], preferred_element_type=jnp.float32)
    h = jnp.maximum(h + b1_ref[...], 0.0)
    # fc2 + relu
    h = jnp.dot(h.astype(jnp.bfloat16), w2_ref[...],
                preferred_element_type=jnp.float32)
    h = jnp.maximum(h + b2_ref[...], 0.0)
    # fc3 + relu
    h = jnp.dot(h.astype(jnp.bfloat16), w3_ref[...],
                preferred_element_type=jnp.float32)
    h = jnp.maximum(h + b3_ref[...], 0.0)
    # fc4 (128 -> 1), lane-dense: contract the 128-dim of w4 (1,128) against
    # the 128-dim of h (tm,128) -> z is a (1, tm) row.  Sigmoid + store then
    # run on full 128-lane vregs instead of one lane per row.
    z = jax.lax.dot_general(
        w4_ref[...], h.astype(jnp.bfloat16),
        dimension_numbers=(((1,), (1,)), ((), ())),
        preferred_element_type=jnp.float32)
    o_ref[...] = jax.nn.sigmoid(z + b4_ref[...])


def _round_up(n, m):
    return (n + m - 1) // m * m


def _choose_tile(B, tile_m):
    """128-aligned batch tile; keep >= 2 grid steps when the batch allows."""
    bp_min = _round_up(B, 128)
    tm = min(_round_up(tile_m, 128), bp_min)
    # v7x has two TensorCores: if the whole (splittable) batch would fit in a
    # single grid step, halve the tile so ("parallel",) can shard two steps
    # across cores and the pipeline has DMA/compute overlap.
    if tm >= bp_min and bp_min >= 256:
        tm = _round_up(pl.cdiv(bp_min, 2), 128)
    return tm


def _vmem_limit_bytes(tm, F, param_arrays):
    x_blocks = 2 * tm * F * 4                    # double-buffered f32 x tile
    out_blocks = 2 * tm * 4                      # double-buffered f32 out row
    w_blocks = 2 * sum(int(a.size) * a.dtype.itemsize for a in param_arrays)
    interm = tm * (128 + 256 + 256 + 128) * 4    # live f32 activations (generous)
    need = x_blocks + out_blocks + w_blocks + interm
    # 2x headroom, floor at the v5e default scoped limit, cap well under
    # v7x's 64 MiB physical VMEM.
    return int(min(max(2 * need, 16 << 20), 56 << 20))


@functools.partial(jax.jit, static_argnames=("tile_m",))
def mlp_forward(x, params, *, tile_m=512):
    """Fused forward pass of ModelWithoutDropout.

    x: (B, n_features) float32
    params: dict with w1..w4 of shape (in, out) and b1..b4 of shape (1, out)
    returns: (B, 1) float32

    tile_m: batch rows per grid step.  512 is a good default everywhere; on
    v6e with very large batches 2048-4096 amortizes per-step overhead further.
    """
    w1, b1 = params["w1"], params["b1"]
    w2, b2 = params["w2"], params["b2"]
    w3, b3 = params["w3"], params["b3"]
    w4, b4 = params["w4"], params["b4"]

    B, F = x.shape

    tm = _choose_tile(B, tile_m)
    Bp = _round_up(B, tm)
    if Bp != B:
        x = jnp.pad(x, ((0, Bp - B), (0, 0)))

    # Weights to bf16 in the wrapper (tiny, reused every step); x stays f32
    # and is cast inside the kernel.
    w1b = w1.astype(jnp.bfloat16)
    w2b = w2.astype(jnp.bfloat16)
    w3b = w3.astype(jnp.bfloat16)
    w4b = w4.reshape(1, w4.shape[0]).astype(jnp.bfloat16)  # (1, 128) row
    b4f = b4.reshape(1, 1).astype(jnp.float32)

    param_arrays = (w1b, b1, w2b, b2, w3b, b3, w4b, b4f)

    def const_spec(a):
        # Weights/biases: same (whole-array) block every grid step, so they
        # stay resident in VMEM across the batch loop.
        return pl.BlockSpec(a.shape, lambda i, _n=a.ndim: (0,) * _n)

    grid_spec = pltpu.PrefetchScalarGridSpec(
        num_scalar_prefetch=0,
        grid=(Bp // tm,),
        in_specs=[
            pl.BlockSpec((tm, F), lambda i: (i, 0)),   # x tile (f32)
            const_spec(w1b), const_spec(b1),
            const_spec(w2b), const_spec(b2),
            const_spec(w3b), const_spec(b3),
            const_spec(w4b), const_spec(b4f),
        ],
        # Lane-dense output: one (1, tm) row per grid step of a (1, Bp) array.
        out_specs=pl.BlockSpec((1, tm), lambda i: (0, i)),
    )

    flops = 2 * Bp * (F * 128 + 128 * 256 + 256 * 128 + 128)
    bytes_accessed = (
        Bp * F * 4 + Bp * 4 +
        sum(int(a.size) * a.dtype.itemsize for a in param_arrays))
    cost = pl.CostEstimate(flops=flops, transcendentals=Bp,
                           bytes_accessed=bytes_accessed)

    out = pl.pallas_call(
        _mlp_kernel,
        out_shape=jax.ShapeDtypeStruct((1, Bp), jnp.float32),
        grid_spec=grid_spec,
        compiler_params=pltpu.CompilerParams(
            dimension_semantics=("parallel",),
            vmem_limit_bytes=_vmem_limit_bytes(tm, F, param_arrays)),
        cost_estimate=cost,
    )(x, w1b, b1, w2b, b2, w3b, b3, w4b, b4f)

    # (1, Bp) row -> (B, 1) column: free row-major reshape + slice.
    return out.reshape(Bp, 1)[:B]


def init_params(key, n_features):
    """Deterministic synthetic init matching nn.Linear shapes.

    PyTorch fc_k has weight (out, in) and bias (out,). We store W as (in, out)
    and b as (1, out) so the kernel computes x @ W + b directly.
    """
    sizes = [(n_features, 128), (128, 256), (256, 128), (128, 1)]
    params = {}
    for idx, (fin, fout) in enumerate(sizes, start=1):
        key, kw, kb = jax.random.split(key, 3)
        bound = 1.0 / jnp.sqrt(fin)  # same scale as PyTorch default init
        params[f"w{idx}"] = jax.random.uniform(
            kw, (fin, fout), jnp.float32, -bound, bound)
        params[f"b{idx}"] = jax.random.uniform(
            kb, (1, fout), jnp.float32, -bound, bound)
    return params


def mlp_reference(x, params):
    """Pure-JAX f32 reference for correctness checking."""
    h = jnp.maximum(x @ params["w1"] + params["b1"], 0.0)
    h = jnp.maximum(h @ params["w2"] + params["b2"], 0.0)
    h = jnp.maximum(h @ params["w3"] + params["b3"], 0.0)
    return jax.nn.sigmoid(h @ params["w4"] + params["b4"])


if __name__ == "__main__":
    key = jax.random.PRNGKey(0)
    k_param, k_x = jax.random.split(key)

    batch, n_features = 8, 32
    params = init_params(k_param, n_features)
    x = jax.random.normal(k_x, (batch, n_features), jnp.float32)

    out = mlp_forward(x, params)
    out = jax.block_until_ready(out)

    ref = mlp_reference(x, params)
    assert out.shape == (batch, 1)
    # bf16 matmuls (f32 accumulation) vs. f32 reference: loose tolerance on
    # the post-sigmoid output.
    assert jnp.allclose(out, ref, atol=2e-2, rtol=2e-2), "mismatch vs reference"

    print("KERNEL_OK")
</pallas_src>

<mosaic_0001>
module attributes {stable_mosaic.version = 11 : i64} {
  func.func @_mlp_kernel(%arg0: i32, %arg1: memref<128x32xf32, #tpu.memory_space<vmem>>, %arg2: memref<32x128xbf16, #tpu.memory_space<vmem>>, %arg3: memref<1x128xf32, #tpu.memory_space<vmem>>, %arg4: memref<128x256xbf16, #tpu.memory_space<vmem>>, %arg5: memref<1x256xf32, #tpu.memory_space<vmem>>, %arg6: memref<256x128xbf16, #tpu.memory_space<vmem>>, %arg7: memref<1x128xf32, #tpu.memory_space<vmem>>, %arg8: memref<1x128xbf16, #tpu.memory_space<vmem>>, %arg9: memref<1x1xf32, #tpu.memory_space<vmem>>, %arg10: memref<1x128xf32, #tpu.memory_space<vmem>>) attributes {dimension_semantics = [#tpu.dimension_semantics<parallel>], iteration_bounds = array<i64: 1>, scalar_prefetch = 0 : i64, scratch_operands = 0 : i64, tpu.core_type = #tpu.core_type<tc>, window_params = [{transform_indices = @transform_0, window_bounds = array<i64: 128, 32>}, {pipeline_mode = #tpu.pipeline_mode<synchronous>, transform_indices = @transform_1, window_bounds = array<i64: 32, 128>}, {pipeline_mode = #tpu.pipeline_mode<synchronous>, transform_indices = @transform_2, window_bounds = array<i64: 1, 128>}, {pipeline_mode = #tpu.pipeline_mode<synchronous>, transform_indices = @transform_3, window_bounds = array<i64: 128, 256>}, {pipeline_mode = #tpu.pipeline_mode<synchronous>, transform_indices = @transform_4, window_bounds = array<i64: 1, 256>}, {pipeline_mode = #tpu.pipeline_mode<synchronous>, transform_indices = @transform_5, window_bounds = array<i64: 256, 128>}, {pipeline_mode = #tpu.pipeline_mode<synchronous>, transform_indices = @transform_6, window_bounds = array<i64: 1, 128>}, {pipeline_mode = #tpu.pipeline_mode<synchronous>, transform_indices = @transform_7, window_bounds = array<i64: 1, 128>}, {pipeline_mode = #tpu.pipeline_mode<synchronous>, transform_indices = @transform_8, window_bounds = array<i64: 1, 1>}, {transform_indices = @transform_9, window_bounds = array<i64: 1, 128>}]} {
    %c0 = arith.constant 0 : index
    %c0_0 = arith.constant 0 : index
    %0 = vector.load %arg1[%c0, %c0_0] : memref<128x32xf32, #tpu.memory_space<vmem>>, vector<128x32xf32>
    %1 = arith.truncf %0 : vector<128x32xf32> to vector<128x32xbf16>
    %c0_1 = arith.constant 0 : index
    %c0_2 = arith.constant 0 : index
    %2 = vector.load %arg2[%c0_1, %c0_2] : memref<32x128xbf16, #tpu.memory_space<vmem>>, vector<32x128xbf16>
    %cst = arith.constant dense<0.000000e+00> : vector<128x128xf32>
    %3 = tpu.matmul %1, %2, %cst {dimension_numbers = #tpu.dot_dimension_numbers<[1], [0], [0], [1], [0, 0, 1, 1], [], []>} : vector<128x32xbf16>, vector<32x128xbf16>, vector<128x128xf32> -> vector<128x128xf32>
    %c0_3 = arith.constant 0 : index
    %c0_4 = arith.constant 0 : index
    %4 = vector.load %arg3[%c0_3, %c0_4] : memref<1x128xf32, #tpu.memory_space<vmem>>, vector<1x128xf32>
    %5 = vector.broadcast %4 : vector<1x128xf32> to vector<128x128xf32>
    %6 = arith.addf %3, %5 : vector<128x128xf32>
    %cst_5 = arith.constant 0.000000e+00 : f32
    %7 = vector.broadcast %cst_5 : f32 to vector<128x128xf32>
    %8 = arith.maximumf %6, %7 : vector<128x128xf32>
    %9 = arith.truncf %8 : vector<128x128xf32> to vector<128x128xbf16>
    %c0_6 = arith.constant 0 : index
    %c0_7 = arith.constant 0 : index
    %10 = vector.load %arg4[%c0_6, %c0_7] : memref<128x256xbf16, #tpu.memory_space<vmem>>, vector<128x256xbf16>
    %cst_8 = arith.constant dense<0.000000e+00> : vector<128x256xf32>
    %11 = tpu.matmul %9, %10, %cst_8 {dimension_numbers = #tpu.dot_dimension_numbers<[1], [0], [0], [1], [0, 0, 1, 1], [], []>} : vector<128x128xbf16>, vector<128x256xbf16>, vector<128x256xf32> -> vector<128x256xf32>
    %c0_9 = arith.constant 0 : index
    %c0_10 = arith.constant 0 : index
    %12 = vector.load %arg5[%c0_9, %c0_10] : memref<1x256xf32, #tpu.memory_space<vmem>>, vector<1x256xf32>
    %13 = vector.broadcast %12 : vector<1x256xf32> to vector<128x256xf32>
    %14 = arith.addf %11, %13 : vector<128x256xf32>
    %cst_11 = arith.constant 0.000000e+00 : f32
    %15 = vector.broadcast %cst_11 : f32 to vector<128x256xf32>
    %16 = arith.maximumf %14, %15 : vector<128x256xf32>
    %17 = arith.truncf %16 : vector<128x256xf32> to vector<128x256xbf16>
    %c0_12 = arith.constant 0 : index
    %c0_13 = arith.constant 0 : index
    %18 = vector.load %arg6[%c0_12, %c0_13] : memref<256x128xbf16, #tpu.memory_space<vmem>>, vector<256x128xbf16>
    %cst_14 = arith.constant dense<0.000000e+00> : vector<128x128xf32>
    %19 = tpu.matmul %17, %18, %cst_14 {dimension_numbers = #tpu.dot_dimension_numbers<[1], [0], [0], [1], [0, 0, 1, 1], [], []>} : vector<128x256xbf16>, vector<256x128xbf16>, vector<128x128xf32> -> vector<128x128xf32>
    %c0_15 = arith.constant 0 : index
    %c0_16 = arith.constant 0 : index
    %20 = vector.load %arg7[%c0_15, %c0_16] : memref<1x128xf32, #tpu.memory_space<vmem>>, vector<1x128xf32>
    %21 = vector.broadcast %20 : vector<1x128xf32> to vector<128x128xf32>
    %22 = arith.addf %19, %21 : vector<128x128xf32>
    %cst_17 = arith.constant 0.000000e+00 : f32
    %23 = vector.broadcast %cst_17 : f32 to vector<128x128xf32>
    %24 = arith.maximumf %22, %23 : vector<128x128xf32>
    %c0_18 = arith.constant 0 : index
    %c0_19 = arith.constant 0 : index
    %25 = vector.load %arg8[%c0_18, %c0_19] : memref<1x128xbf16, #tpu.memory_space<vmem>>, vector<1x128xbf16>
    %26 = arith.truncf %24 : vector<128x128xf32> to vector<128x128xbf16>
    %cst_20 = arith.constant dense<0.000000e+00> : vector<1x128xf32>
    %27 = tpu.matmul %25, %26, %cst_20 {dimension_numbers = #tpu.dot_dimension_numbers<[1], [1], [0], [0], [0, 0, 1, 0], [], []>} : vector<1x128xbf16>, vector<128x128xbf16>, vector<1x128xf32> -> vector<1x128xf32>
    %c0_21 = arith.constant 0 : index
    %c0_22 = arith.constant 0 : index
    %28 = vector.load %arg9[%c0_21, %c0_22] : memref<1x1xf32, #tpu.memory_space<vmem>>, vector<1x1xf32>
    %29 = vector.broadcast %28 : vector<1x1xf32> to vector<1x128xf32>
    %30 = arith.addf %27, %29 : vector<1x128xf32>
    %31 = arith.negf %30 : vector<1x128xf32>
    %32 = math.exp %31 : vector<1x128xf32>
    %cst_23 = arith.constant 1.000000e+00 : f32
    %33 = vector.broadcast %cst_23 : f32 to vector<1x128xf32>
    %34 = arith.addf %33, %32 : vector<1x128xf32>
    %35 = arith.divf %33, %34 : vector<1x128xf32>
    %c0_24 = arith.constant 0 : index
    %c0_25 = arith.constant 0 : index
    %36 = vector.load %arg10[%c0_24, %c0_25] : memref<1x128xf32, #tpu.memory_space<vmem>>, vector<1x128xf32>
    tpu.vector_store %arg10[%c0_24, %c0_25], %35 {strides = array<i32>} : memref<1x128xf32, #tpu.memory_space<vmem>>, vector<1x128xf32>,
    return
  }
  func.func @transform_0(%arg0: i32) -> (i32, i32) {
    %c0_i32 = arith.constant 0 : i32
    %c0_i32_0 = arith.constant 0 : i32
    return %arg0, %c0_i32 : i32, i32
  }
  func.func @transform_1(%arg0: i32) -> (i32, i32) {
    %c0_i32 = arith.constant 0 : i32
    %c0_i32_0 = arith.constant 0 : i32
    %c0_i32_1 = arith.constant 0 : i32
    return %c0_i32, %c0_i32_0 : i32, i32
  }
  func.func @transform_2(%arg0: i32) -> (i32, i32) {
    %c0_i32 = arith.constant 0 : i32
    %c0_i32_0 = arith.constant 0 : i32
    %c0_i32_1 = arith.constant 0 : i32
    return %c0_i32, %c0_i32_0 : i32, i32
  }
  func.func @transform_3(%arg0: i32) -> (i32, i32) {
    %c0_i32 = arith.constant 0 : i32
    %c0_i32_0 = arith.constant 0 : i32
    %c0_i32_1 = arith.constant 0 : i32
    return %c0_i32, %c0_i32_0 : i32, i32
  }
  func.func @transform_4(%arg0: i32) -> (i32, i32) {
    %c0_i32 = arith.constant 0 : i32
    %c0_i32_0 = arith.constant 0 : i32
    %c0_i32_1 = arith.constant 0 : i32
    return %c0_i32, %c0_i32_0 : i32, i32
  }
  func.func @transform_5(%arg0: i32) -> (i32, i32) {
    %c0_i32 = arith.constant 0 : i32
    %c0_i32_0 = arith.constant 0 : i32
    %c0_i32_1 = arith.constant 0 : i32
    return %c0_i32, %c0_i32_0 : i32, i32
  }
  func.func @transform_6(%arg0: i32) -> (i32, i32) {
    %c0_i32 = arith.constant 0 : i32
    %c0_i32_0 = arith.constant 0 : i32
    %c0_i32_1 = arith.constant 0 : i32
    return %c0_i32, %c0_i32_0 : i32, i32
  }
  func.func @transform_7(%arg0: i32) -> (i32, i32) {
    %c0_i32 = arith.constant 0 : i32
    %c0_i32_0 = arith.constant 0 : i32
    %c0_i32_1 = arith.constant 0 : i32
    return %c0_i32, %c0_i32_0 : i32, i32
  }
  func.func @transform_8(%arg0: i32) -> (i32, i32) {
    %c0_i32 = arith.constant 0 : i32
    %c0_i32_0 = arith.constant 0 : i32
    %c0_i32_1 = arith.constant 0 : i32
    return %c0_i32, %c0_i32_0 : i32, i32
  }
  func.func @transform_9(%arg0: i32) -> (i32, i32) {
    %c0_i32 = arith.constant 0 : i32
    %c0_i32_0 = arith.constant 0 : i32
    return %c0_i32, %arg0 : i32, i32
  }
}

</mosaic_0001>

<bundles_post_ra>
// kernel: mlp_forward.1
= control target key start
LH: loop header
LB: loop body
LE: loop exit
PB: predicated region body
PF: predicated region fallthrough
CT: control target
= control target key end

     0   :  { %vm82_vm0 = vcmask 261120   ;;  %v1033_v42 = vmov 0   ;;  %vm1035_vm1 = vmmov 0   ;;  %s1342_s1 = inlined_call_operand.vmem [shape: bf16[32,128], index: 1, kind: input, shape index: {}]   ;;  %s1343_s0 = inlined_call_operand.vmem [shape: f32[128,32], index: 0, kind: input, shape index: {}]   ;;  %s1344_s3 = inlined_call_operand.vmem [shape: bf16[128,256], index: 3, kind: input, shape index: {}]   ;;  %s1345_s5 = inlined_call_operand.vmem [shape: bf16[256,128], index: 5, kind: input, shape index: {}]   ;;  %s1346_s2 = inlined_call_operand.vmem [shape: f32[1,128], index: 2, kind: input, shape index: {}]   ;;  %s1347_s4 = inlined_call_operand.vmem [shape: f32[1,256], index: 4, kind: input, shape index: {}]   ;;  %s1348_s8 = inlined_call_operand.<no memory space> [shape: f32[1,1], index: 8, kind: input, shape index: {}]   ;;  %s1349_s6 = inlined_call_operand.vmem [shape: f32[1,128], index: 6, kind: input, shape index: {}]   ;;  %s1350_s7 = inlined_call_operand.vmem [shape: bf16[1,128], index: 7, kind: input, shape index: {}]   ;;  %s1351_s9 = inlined_call_operand.vmem [shape: f32[1,128], index: 9, kind: output, shape index: {}]  }
   0x1   :  { %v987_v0 = vld [vmem:[%s1342_s1] sm:$0xff]   ;;  %v988_v1 = vld [vmem:[%s1342_s1 + $0x8] sm:$0xff]   ;;  %v37_v5 = vld [vmem:[%s1343_s0 + $0x10] sm:$0xff]  ;;  %368 = vmatprep.mubr.bf16.mxu1 %v1033_v42  ;;  %986 = vset.pattern.permute.xlu0 %v1033_v42 }
   0x2   :  { %943 = vmatprep.subr.bf16.mxu0 %v987_v0  ;;  %v35_v2 = vld [vmem:[%s1343_s0] sm:$0xff]  ;;  %v36_v3 = vld [vmem:[%s1343_s0 + $0x8] sm:$0xff]  ;;  %v38_v6 = vld [vmem:[%s1343_s0 + $0x18] sm:$0xff] }
   0x3   :  { %944 = vmatpush3.bf16.msra.mxu0 %v987_v0  ;;  %v51_v4 = vpack.c.bf16 %v36_v3, %v35_v2  ;;  %v39_v7 = vld [vmem:[%s1343_s0 + $0x20] sm:$0xff]  ;;  %v40_v8 = vld [vmem:[%s1343_s0 + $0x28] sm:$0xff]  ;;  %v52_v9 = vpack.c.bf16 %v38_v6, %v37_v5  ;;  %v41_v13 = vld [vmem:[%s1343_s0 + $0x30] sm:$0xff] }
   0x4   :  { %945 = vmatprep.subr.bf16.mxu0 %v988_v1  ;;  %v53_v10 = vpack.c.bf16 %v40_v8, %v39_v7  ;;  %v989_v11 = vld [vmem:[%s1344_s3 + $0x4] ss:$8 sps:$4 sm:$0xff]   ;;  %v991_v12 = vld [vmem:[%s1344_s3] ss:$8 sps:$4 sm:$0xff]   ;;  %v42_v14 = vld [vmem:[%s1343_s0 + $0x38] sm:$0xff] }
   0x5   :  { %947 = vmatprep.mubr.msk.bf16.mxu0 %vm82_vm0, %v51_v4  ;;  %v992_v15 = vld [vmem:[%s1344_s3 + $0x14] ss:$8 sps:$4 sm:$0xff]   ;;  %v43_v16 = vld [vmem:[%s1343_s0 + $0x40] sm:$0xff]  ;;  %336 = vmatprep.subr.bf16.mxu1 %v989_v11  ;;  %v994_v17 = vld [vmem:[%s1344_s3 + $0x10] ss:$8 sps:$4 sm:$0xff]   ;;  %v54_v20 = vpack.c.bf16 %v42_v14, %v41_v13 }
   0x6   :  { %337 = vmatpush1.bf16.msra.mxu1 %v991_v12  ;;  %v44_v18 = vld [vmem:[%s1343_s0 + $0x48] sm:$0xff]  ;;  %v998_v23 = vld [vmem:[%s1344_s3 + $0x34] ss:$8 sps:$4 sm:$0xff]   ;;  %v1000_v26 = vld [vmem:[%s1344_s3 + $0x30] ss:$8 sps:$4 sm:$0xff]  }
   0x7   :  { %946 = vmatpush3.bf16.msra.mxu0 %v988_v1  ;;  %338 = vmatprep.subr.bf16.mxu1 %v992_v15  ;;  %v995_v19 = vld [vmem:[%s1344_s3 + $0x24] ss:$8 sps:$4 sm:$0xff]   ;;  %v55_v21 = vpack.c.bf16 %v44_v18, %v43_v16  ;;  %v997_v22 = vld [vmem:[%s1344_s3 + $0x20] ss:$8 sps:$4 sm:$0xff]   ;;  %v45_v24 = vld [vmem:[%s1343_s0 + $0x50] sm:$0xff] }
   0x8   :  { %v46_v25 = vld [vmem:[%s1343_s0 + $0x58] sm:$0xff]  ;;  %v47_v27 = vld [vmem:[%s1343_s0 + $0x60] sm:$0xff]  ;;  %v48_v28 = vld [vmem:[%s1343_s0 + $0x68] sm:$0xff] }
   0x9   :  { %v1001_v29 = vld [vmem:[%s1344_s3 + $0x44] ss:$8 sps:$4 sm:$0xff]   ;;  %v56_v30 = vpack.c.bf16 %v46_v25, %v45_v24  ;;  %v57_v31 = vpack.c.bf16 %v48_v28, %v47_v27  ;;  %v1003_v32 = vld [vmem:[%s1344_s3 + $0x40] ss:$8 sps:$4 sm:$0xff]   ;;  %v1004_v33 = vld [vmem:[%s1344_s3 + $0x54] ss:$8 sps:$4 sm:$0xff]  }
   0xa   :  { %948 = vmatmul.mubr.msk.bf16.vlgmr.msra.gmra.mrb[0].mxu0 %vm82_vm0, %v52_v9  ;;  %339 = vmatpush1.bf16.msra.mxu1 %v994_v17  ;;  %v49_v34 = vld [vmem:[%s1343_s0 + $0x70] sm:$0xff]  ;;  %v50_v35 = vld [vmem:[%s1343_s0 + $0x78] sm:$0xff]  ;;  %v1007_v38 = vld [vmem:[%s1344_s3 + $0x64] ss:$8 sps:$4 sm:$0xff]  }
   0xb   :  { %951 = vmatprep.mubr.msk.bf16.mxu0 %vm82_vm0, %v53_v10  ;;  %340 = vmatprep.subr.bf16.mxu1 %v995_v19  ;;  %v1006_v36 = vld [vmem:[%s1344_s3 + $0x50] ss:$8 sps:$4 sm:$0xff]   ;;  %v58_v37 = vpack.c.bf16 %v50_v35, %v49_v34  ;;  %v1009_v39 = vld [vmem:[%s1344_s3 + $0x60] ss:$8 sps:$4 sm:$0xff]   ;;  %v1010_v40 = vld [vmem:[%s1344_s3 + $0x74] ss:$8 sps:$4 sm:$0xff]  }
   0xc   :  { %v1012_v41 = vld [vmem:[%s1344_s3 + $0x70] ss:$8 sps:$4 sm:$0xff]   ;;  %v1013_v43 = vld [vmem:[%s1345_s5 + $0x40] sm:$0xff]   ;;  %v1015_v45 = vld [vmem:[%s1345_s5 + $0x48] sm:$0xff]  }
   0xd   :  { %v1014_v44 = vld [vmem:[%s1345_s5] sm:$0xff]   ;;  %870 = vmatprep.subr.bf16.mxu0 %v1013_v43  ;;  %v1016_v46 = vld [vmem:[%s1345_s5 + $0x8] sm:$0xff]   ;;  %v1017_v47 = vld [vmem:[%s1345_s5 + $0x50] sm:$0xff]  }
   0xe   :  { %341 = vmatpush1.bf16.msra.mxu1 %v997_v22  ;;  %871 = vmatpush3.bf16.msra.mxu0 %v1014_v44  ;;  %v1018_v48 = vld [vmem:[%s1345_s5 + $0x10] sm:$0xff]   ;;  %v1019_v49 = vld [vmem:[%s1345_s5 + $0x58] sm:$0xff]   ;;  %v1021_v51 = vld [vmem:[%s1345_s5 + $0x60] sm:$0xff]  }
   0xf   :  { %342 = vmatprep.subr.bf16.mxu1 %v998_v23  ;;  %872 = vmatprep.subr.bf16.mxu0 %v1015_v45  ;;  %v1020_v50 = vld [vmem:[%s1345_s5 + $0x18] sm:$0xff]   ;;  %v1022_v52 = vld [vmem:[%s1345_s5 + $0x20] sm:$0xff]   ;;  %v1023_v53 = vld [vmem:[%s1345_s5 + $0x68] sm:$0xff]  }
  0x10   :  { %v815_v54 = vld [vmem:[%s1346_s2] ss:$0 sm:$0xff] }
  0x12   :  { %952 = vmatmul.mubr.msk.bf16.gmra.mrb[4].mxu0 %vm82_vm0, %v54_v20  ;;  %343 = vmatpush1.bf16.msra.mxu1 %v1000_v26 }
  0x13   :  { %955 = vmatprep.mubr.msk.bf16.mxu0 %vm82_vm0, %v55_v21  ;;  %344 = vmatprep.subr.bf16.mxu1 %v1001_v29 }
  0x14   :  { %873 = vmatpush3.bf16.msra.mxu0 %v1016_v46 }
  0x15   :  { %874 = vmatprep.subr.bf16.mxu0 %v1017_v47 }
  0x16   :  { %345 = vmatpush1.bf16.msra.mxu1 %v1003_v32 }
  0x17   :  { %346 = vmatprep.subr.bf16.mxu1 %v1004_v33 }
  0x18   :  { %875 = vmatpush3.bf16.msra.mxu0 %v1018_v48  ;;  %v1024_v48 = vld [vmem:[%s1345_s5 + $0x28] sm:$0xff]  }
  0x19   :  { %876 = vmatprep.subr.bf16.mxu0 %v1019_v49  ;;  %v1025_v49 = vld [vmem:[%s1345_s5 + $0x70] sm:$0xff]  }
  0x1a   :  { %956 = vmatmul.mubr.msk.bf16.gmra.mrb[8].mxu0 %vm82_vm0, %v56_v30  ;;  %347 = vmatpush1.bf16.msra.mxu1 %v1006_v36 }
  0x1b   :  { %959 = vmatprep.mubr.msk.bf16.mxu0 %vm82_vm0, %v57_v31  ;;  %348 = vmatprep.subr.bf16.mxu1 %v1007_v38 }
  0x1c   :  { %877 = vmatpush3.bf16.msra.mxu0 %v1020_v50  ;;  %v1026_v50 = vld [vmem:[%s1345_s5 + $0x30] sm:$0xff]  }
  0x1d   :  { %878 = vmatprep.subr.bf16.mxu0 %v1021_v51  ;;  %v1028_v51 = vld [vmem:[%s1345_s5 + $0x38] sm:$0xff]  }
  0x1e   :  { %349 = vmatpush1.bf16.msra.mxu1 %v1009_v39 }
  0x1f   :  { %350 = vmatprep.subr.bf16.mxu1 %v1010_v40 }
  0x20   :  { %879 = vmatpush3.bf16.msra.mxu0 %v1022_v52  ;;  %v246_v52 = vlaneseq }
  0x21   :  { %880 = vmatprep.subr.bf16.mxu0 %v1023_v53 }
  0x22   :  { %960 = vmatmul.mubr.msk.bf16.gmra.mrb[12].mxu0 %vm82_vm0, %v58_v37  ;;  %351 = vmatpush1.bf16.msra.mxu1 %v1012_v41  ;;  %v1256_v53 = vshrl.u32 %v246_v52, 7 }
  0x24   :  { %881 = vmatpush3.bf16.msra.mxu0 %v1024_v48 }
  0x25   :  { %882 = vmatprep.subr.bf16.mxu0 %v1025_v49 }
  0x28   :  { %883 = vmatpush3.bf16.msra.mxu0 %v1026_v50 }
  0xdd   :  { %v949_v55 = vpop.f32.mrb[0].mxu0 }
  0xde   :  { %v150_v56 = vadd.f32 %v949_v55, %v815_v54  ;;  %v141_v57 = vpop.f32.mrb[1].mxu0  ;;  %v244_v55 = vld [vmem:[%s1347_s4] sm:$0x3] }
  0xdf   :  { %v142_v58 = vadd.f32 %v815_v54, %v141_v57  ;;  %v950_v59 = vpop.f32.mrb[2].mxu0 }
  0xe0   :  { %v153_v60 = vadd.f32 %v950_v59, %v815_v54  ;;  %v144_v61 = vpop.f32.mrb[3].mxu0  ;;  %v206_v63 = vmax.f32 %v150_v56, 0.0  ;;  %v252_v56 = vsub.s32 1, %v1256_v53 }
  0xe1   :  { %v145_v62 = vadd.f32 %v815_v54, %v144_v61  ;;  %v204_v1 = vmax.f32 %v142_v58, 0.0 }
  0xe2   :  { %v207_v0 = vmax.f32 %v153_v60, 0.0  ;;  %v1267_v58 = vrot.slane %v244_v55, %v252_v56 }
  0xe3   :  { %v205_v2 = vmax.f32 %v145_v62, 0.0 }
  0xe4   :  { %v221_v3 = vpack.c.bf16 %v207_v0, %v206_v63 }
  0xe5   :  { %v220_v4 = vpack.c.bf16 %v205_v2, %v204_v1  ;;  %v953_v5 = vpop.f32.mrb[4].mxu0 }
  0xe6   :  { %v166_v6 = vadd.f32 %v953_v5, %v815_v54  ;;  %v157_v7 = vpop.f32.mrb[5].mxu0 }
  0xe7   :  { %369 = vmatmul.mubr.bf16.vlgmr.msra.gmra.mrb[0].mxu1 %v220_v4  ;;  %v158_v8 = vadd.f32 %v815_v54, %v157_v7  ;;  %v954_v9 = vpop.f32.mrb[6].mxu0 }
  0xe8   :  { %v210_v10 = vmax.f32 %v166_v6, 0.0  ;;  %v169_v11 = vadd.f32 %v954_v9, %v815_v54  ;;  %v160_v12 = vpop.f32.mrb[7].mxu0  ;;  %378 = vmatprep.mubr.bf16.mxu1 %v1033_v42 }
  0xe9   :  { %v208_v13 = vmax.f32 %v158_v8, 0.0  ;;  %v161_v14 = vadd.f32 %v815_v54, %v160_v12 }
  0xea   :  { %v211_v15 = vmax.f32 %v169_v11, 0.0 }
  0xeb   :  { %v209_v16 = vmax.f32 %v161_v14, 0.0 }
  0xec   :  { %v223_v17 = vpack.c.bf16 %v211_v15, %v210_v10 }
  0xed   :  { %v222_v18 = vpack.c.bf16 %v209_v16, %v208_v13  ;;  %v957_v19 = vpop.f32.mrb[8].mxu0 }
  0xee   :  { %v182_v20 = vadd.f32 %v957_v19, %v815_v54  ;;  %v173_v21 = vpop.f32.mrb[9].mxu0 }
  0xef   :  { %379 = vmatmul.mubr.bf16.gmra.mrb[4].mxu1 %v221_v3  ;;  %v174_v22 = vadd.f32 %v815_v54, %v173_v21  ;;  %v958_v23 = vpop.f32.mrb[10].mxu0 }
  0xf0   :  { %388 = vmatprep.mubr.bf16.mxu1 %v1033_v42  ;;  %v214_v24 = vmax.f32 %v182_v20, 0.0  ;;  %v185_v25 = vadd.f32 %v958_v23, %v815_v54  ;;  %v176_v26 = vpop.f32.mrb[11].mxu0 }
  0xf1   :  { %v212_v27 = vmax.f32 %v174_v22, 0.0  ;;  %v177_v28 = vadd.f32 %v815_v54, %v176_v26 }
  0xf2   :  { %v215_v29 = vmax.f32 %v185_v25, 0.0 }
  0xf3   :  { %v213_v30 = vmax.f32 %v177_v28, 0.0 }
  0xf4   :  { %v225_v31 = vpack.c.bf16 %v215_v29, %v214_v24 }
  0xf5   :  { %v224_v32 = vpack.c.bf16 %v213_v30, %v212_v27  ;;  %v961_v33 = vpop.f32.mrb[12].mxu0 }
  0xf6   :  { %v198_v34 = vadd.f32 %v961_v33, %v815_v54  ;;  %v189_v35 = vpop.f32.mrb[13].mxu0 }
  0xf7   :  { %389 = vmatmul.mubr.bf16.gmra.mrb[8].mxu1 %v222_v18  ;;  %v190_v36 = vadd.f32 %v815_v54, %v189_v35  ;;  %v962_v37 = vpop.f32.mrb[14].mxu0 }
  0xf8   :  { %398 = vmatprep.mubr.bf16.mxu1 %v1033_v42  ;;  %v218_v38 = vmax.f32 %v198_v34, 0.0  ;;  %v201_v39 = vadd.f32 %v962_v37, %v815_v54  ;;  %v192_v40 = vpop.f32.mrb[15].mxu0 }
  0xf9   :  { %v216_v41 = vmax.f32 %v190_v36, 0.0  ;;  %v193_v43 = vadd.f32 %v815_v54, %v192_v40  ;;  %v248_v54 = vsub.s32 0, %v1256_v53 }
  0xfa   :  { %v219_v44 = vmax.f32 %v201_v39, 0.0 }
  0xfb   :  { %v217_v45 = vmax.f32 %v193_v43, 0.0  ;;  %v1265_v57 = vrot.slane %v244_v55, %v248_v54 }
  0xfc   :  { %v227_v46 = vpack.c.bf16 %v219_v44, %v218_v38 }
  0xfd   :  { %v226_v47 = vpack.c.bf16 %v217_v45, %v216_v41 }
  0xff   :  { %399 = vmatmul.mubr.bf16.gmra.mrb[12].mxu1 %v223_v17 }
 0x100   :  { %408 = vmatprep.mubr.bf16.mxu1 %v1033_v42 }
 0x107   :  { %409 = vmatmul.mubr.bf16.gmra.mrb[16].mxu1 %v224_v32 }
 0x108   :  { %418 = vmatprep.mubr.bf16.mxu1 %v1033_v42 }
 0x10f   :  { %419 = vmatmul.mubr.bf16.gmra.mrb[20].mxu1 %v225_v31 }
 0x110   :  { %428 = vmatprep.mubr.bf16.mxu1 %v1033_v42 }
 0x117   :  { %429 = vmatmul.mubr.bf16.gmra.mrb[24].mxu1 %v226_v47 }
 0x118   :  { %438 = vmatprep.mubr.bf16.mxu1 %v1033_v42  ;;  %v1027_v42 = vld [vmem:[%s1345_s5 + $0x78] sm:$0xff]  }
 0x119   :  { %884 = vmatprep.subr.bf16.mxu0 %v1027_v42 }
 0x11a   :  { %885 = vmatpush3.bf16.msra.mxu0 %v1028_v51 }
 0x11f   :  { %439 = vmatmul.mubr.bf16.gmra.mrb[28].mxu1 %v227_v46 }
 0x1ba   :  { %v370_v59 = vpop.f32.mrb[0].mxu1 }
 0x1bb   :  { %v371_v60 = vadd.f32 %v370_v59, %v1265_v57  ;;  %v372_v61 = vpop.f32.mrb[1].mxu1 }
 0x1bc   :  { %v373_v62 = vadd.f32 %v372_v61, %v1267_v58  ;;  %v374_v63 = vpop.f32.mrb[2].mxu1 }
 0x1bd   :  { %v375_v0 = vadd.f32 %v374_v63, %v1265_v57  ;;  %v376_v1 = vpop.f32.mrb[3].mxu1  ;;  %v449_v3 = vmax.f32 %v371_v60, 0.0 }
 0x1be   :  { %v377_v2 = vadd.f32 %v376_v1, %v1267_v58  ;;  %v450_v5 = vmax.f32 %v373_v62, 0.0 }
 0x1bf   :  { %v451_v4 = vmax.f32 %v375_v0, 0.0 }
 0x1c0   :  { %v452_v6 = vmax.f32 %v377_v2, 0.0 }
 0x1c1   :  { %v481_v7 = vpack.c.bf16 %v451_v4, %v449_v3 }
 0x1c2   :  { %v482_v8 = vpack.c.bf16 %v452_v6, %v450_v5  ;;  %v380_v9 = vpop.f32.mrb[4].mxu1 }
 0x1c3   :  { %v381_v10 = vadd.f32 %v380_v9, %v1265_v57  ;;  %v382_v11 = vpop.f32.mrb[5].mxu1 }
 0x1c4   :  { %v383_v12 = vadd.f32 %v382_v11, %v1267_v58  ;;  %v384_v13 = vpop.f32.mrb[6].mxu1  ;;  %664 = vmatprep.mubr.bf16.mxu0 %v482_v8 }
 0x1c5   :  { %v385_v14 = vadd.f32 %v384_v13, %v1265_v57  ;;  %v386_v15 = vpop.f32.mrb[7].mxu1  ;;  %665 = vmatmul.mubr.bf16.vlgmr.msra.gmra.mrb[16].mxu0 %v481_v7  ;;  %v453_v17 = vmax.f32 %v381_v10, 0.0 }
 0x1c6   :  { %v387_v16 = vadd.f32 %v386_v15, %v1267_v58  ;;  %v454_v19 = vmax.f32 %v383_v12, 0.0 }
 0x1c7   :  { %v455_v18 = vmax.f32 %v385_v14, 0.0 }
 0x1c8   :  { %v456_v20 = vmax.f32 %v387_v16, 0.0 }
 0x1c9   :  { %v483_v21 = vpack.c.bf16 %v455_v18, %v453_v17 }
 0x1ca   :  { %v484_v22 = vpack.c.bf16 %v456_v20, %v454_v19  ;;  %v390_v23 = vpop.f32.mrb[8].mxu1 }
 0x1cb   :  { %v391_v24 = vadd.f32 %v390_v23, %v1265_v57  ;;  %v392_v25 = vpop.f32.mrb[9].mxu1 }
 0x1cc   :  { %v393_v26 = vadd.f32 %v392_v25, %v1267_v58  ;;  %v394_v27 = vpop.f32.mrb[10].mxu1  ;;  %672 = vmatprep.mubr.bf16.mxu0 %v484_v22 }
 0x1cd   :  { %v395_v28 = vadd.f32 %v394_v27, %v1265_v57  ;;  %v396_v29 = vpop.f32.mrb[11].mxu1  ;;  %673 = vmatmul.mubr.bf16.gmra.mrb[20].mxu0 %v483_v21  ;;  %v457_v31 = vmax.f32 %v391_v24, 0.0 }
 0x1ce   :  { %v397_v30 = vadd.f32 %v396_v29, %v1267_v58  ;;  %v458_v33 = vmax.f32 %v393_v26, 0.0 }
 0x1cf   :  { %v459_v32 = vmax.f32 %v395_v28, 0.0 }
 0x1d0   :  { %v460_v34 = vmax.f32 %v397_v30, 0.0 }
 0x1d1   :  { %v485_v35 = vpack.c.bf16 %v459_v32, %v457_v31 }
 0x1d2   :  { %v486_v36 = vpack.c.bf16 %v460_v34, %v458_v33  ;;  %v400_v37 = vpop.f32.mrb[12].mxu1 }
 0x1d3   :  { %v401_v38 = vadd.f32 %v400_v37, %v1265_v57  ;;  %v402_v39 = vpop.f32.mrb[13].mxu1 }
 0x1d4   :  { %v403_v40 = vadd.f32 %v402_v39, %v1267_v58  ;;  %v404_v41 = vpop.f32.mrb[14].mxu1  ;;  %680 = vmatprep.mubr.bf16.mxu0 %v486_v36 }
 0x1d5   :  { %v405_v43 = vadd.f32 %v404_v41, %v1265_v57  ;;  %v406_v44 = vpop.f32.mrb[15].mxu1  ;;  %681 = vmatmul.mubr.bf16.gmra.mrb[24].mxu0 %v485_v35  ;;  %v461_v46 = vmax.f32 %v401_v38, 0.0 }
 0x1d6   :  { %v407_v45 = vadd.f32 %v406_v44, %v1267_v58  ;;  %v462_v48 = vmax.f32 %v403_v40, 0.0 }
 0x1d7   :  { %v463_v47 = vmax.f32 %v405_v43, 0.0 }
 0x1d8   :  { %v464_v49 = vmax.f32 %v407_v45, 0.0 }
 0x1d9   :  { %v487_v50 = vpack.c.bf16 %v463_v47, %v461_v46 }
 0x1da   :  { %v488_v42 = vpack.c.bf16 %v464_v49, %v462_v48  ;;  %v410_v51 = vpop.f32.mrb[16].mxu1  ;;  %v1034_v48 = vmov 0.0  }
 0x1db   :  { %v411_v52 = vadd.f32 %v410_v51, %v1265_v57  ;;  %v412_v55 = vpop.f32.mrb[17].mxu1  ;;  %963 = vmatprep.subr.bf16.mxu1 %v1034_v48  ;;  %979 = vmatprep.mubr.msk.bf16.mxu1 %vm1035_vm1, %v1034_v48 }
 0x1dc   :  { %v413_v56 = vadd.f32 %v412_v55, %v1267_v58  ;;  %v414_v59 = vpop.f32.mrb[18].mxu1  ;;  %688 = vmatprep.mubr.bf16.mxu0 %v488_v42 }
 0x1dd   :  { %v415_v60 = vadd.f32 %v414_v59, %v1265_v57  ;;  %v416_v61 = vpop.f32.mrb[19].mxu1  ;;  %689 = vmatmul.mubr.bf16.gmra.mrb[28].mxu0 %v487_v50  ;;  %v465_v63 = vmax.f32 %v411_v52, 0.0  ;;  %v1309_v50 = vld [vmem:[%s1349_s6] ss:$0 sm:$0xff] }
 0x1de   :  { %v417_v62 = vadd.f32 %v416_v61, %v1267_v58  ;;  %v466_v1 = vmax.f32 %v413_v56, 0.0 }
 0x1df   :  { %v467_v0 = vmax.f32 %v415_v60, 0.0 }
 0x1e0   :  { %v468_v2 = vmax.f32 %v417_v62, 0.0 }
 0x1e1   :  { %v489_v3 = vpack.c.bf16 %v467_v0, %v465_v63 }
 0x1e2   :  { %v490_v4 = vpack.c.bf16 %v468_v2, %v466_v1  ;;  %v420_v5 = vpop.f32.mrb[20].mxu1 }
 0x1e3   :  { %v421_v6 = vadd.f32 %v420_v5, %v1265_v57  ;;  %v422_v7 = vpop.f32.mrb[21].mxu1 }
 0x1e4   :  { %v423_v8 = vadd.f32 %v422_v7, %v1267_v58  ;;  %v424_v9 = vpop.f32.mrb[22].mxu1  ;;  %696 = vmatprep.mubr.bf16.mxu0 %v490_v4 }
 0x1e5   :  { %v425_v10 = vadd.f32 %v424_v9, %v1265_v57  ;;  %v426_v11 = vpop.f32.mrb[23].mxu1  ;;  %697 = vmatmul.mubr.bf16.gmra.mrb[32].mxu0 %v489_v3  ;;  %v469_v13 = vmax.f32 %v421_v6, 0.0 }
 0x1e6   :  { %v427_v12 = vadd.f32 %v426_v11, %v1267_v58  ;;  %v470_v15 = vmax.f32 %v423_v8, 0.0 }
 0x1e7   :  { %v471_v14 = vmax.f32 %v425_v10, 0.0 }
 0x1e8   :  { %v472_v16 = vmax.f32 %v427_v12, 0.0 }
 0x1e9   :  { %v491_v17 = vpack.c.bf16 %v471_v14, %v469_v13 }
 0x1ea   :  { %v492_v18 = vpack.c.bf16 %v472_v16, %v470_v15  ;;  %v430_v19 = vpop.f32.mrb[24].mxu1 }
 0x1eb   :  { %v431_v20 = vadd.f32 %v430_v19, %v1265_v57  ;;  %v432_v21 = vpop.f32.mrb[25].mxu1 }
 0x1ec   :  { %v433_v22 = vadd.f32 %v432_v21, %v1267_v58  ;;  %v434_v23 = vpop.f32.mrb[26].mxu1  ;;  %704 = vmatprep.mubr.bf16.mxu0 %v492_v18 }
 0x1ed   :  { %v435_v24 = vadd.f32 %v434_v23, %v1265_v57  ;;  %v436_v25 = vpop.f32.mrb[27].mxu1  ;;  %705 = vmatmul.mubr.bf16.gmra.mrb[36].mxu0 %v491_v17  ;;  %v473_v27 = vmax.f32 %v431_v20, 0.0 }
 0x1ee   :  { %v437_v26 = vadd.f32 %v436_v25, %v1267_v58  ;;  %v474_v29 = vmax.f32 %v433_v22, 0.0 }
 0x1ef   :  { %v475_v28 = vmax.f32 %v435_v24, 0.0 }
 0x1f0   :  { %v476_v30 = vmax.f32 %v437_v26, 0.0 }
 0x1f1   :  { %v493_v31 = vpack.c.bf16 %v475_v28, %v473_v27 }
 0x1f2   :  { %v494_v32 = vpack.c.bf16 %v476_v30, %v474_v29  ;;  %v440_v33 = vpop.f32.mrb[28].mxu1 }
 0x1f3   :  { %v441_v34 = vadd.f32 %v440_v33, %v1265_v57  ;;  %v442_v35 = vpop.f32.mrb[29].mxu1 }
 0x1f4   :  { %v443_v36 = vadd.f32 %v442_v35, %v1267_v58  ;;  %v444_v37 = vpop.f32.mrb[30].mxu1  ;;  %712 = vmatprep.mubr.bf16.mxu0 %v494_v32 }
 0x1f5   :  { %v445_v38 = vadd.f32 %v444_v37, %v1265_v57  ;;  %v446_v39 = vpop.f32.mrb[31].mxu1  ;;  %713 = vmatmul.mubr.bf16.gmra.mrb[40].mxu0 %v493_v31  ;;  %v477_v41 = vmax.f32 %v441_v34, 0.0  ;;  %v14_v57 = vstv %s1348_s8 }
 0x1f6   :  { %v447_v40 = vadd.f32 %v446_v39, %v1267_v58  ;;  %v478_v44 = vmax.f32 %v443_v36, 0.0  ;;  %15 = vst [vmem:[#allocation2] sm:$0x1] %v14_v57 }
 0x1f7   :  { %v479_v43 = vmax.f32 %v445_v38, 0.0 }
 0x1f8   :  { %v480_v45 = vmax.f32 %v447_v40, 0.0 }
 0x1f9   :  { %v495_v46 = vpack.c.bf16 %v479_v43, %v477_v41 }
 0x1fa   :  { %v496_v47 = vpack.c.bf16 %v480_v45, %v478_v44 }
 0x1fc   :  { %720 = vmatprep.mubr.bf16.mxu0 %v496_v47 }
 0x1fd   :  { %721 = vmatmul.mubr.bf16.gmra.mrb[44].mxu0 %v495_v46  ;;  %v754_v58 = vld [vmem:[#allocation2] sm:$0x1] }
 0x1fe   :  { %757 = vperm.xlu0 %986, %v754_v58  }
 0x298   :  { %v886_v49 = vpop.f32.mrb[16].mxu0 }
 0x299   :  { %v887_v42 = vpop.f32.mrb[17].mxu0 }
 0x29a   :  { %v888_v51 = vadd.f32 %v887_v42, %v886_v49  ;;  %v889_v52 = vpop.f32.mrb[18].mxu0 }
 0x29b   :  { %v890_v55 = vpop.f32.mrb[19].mxu0 }
 0x29c   :  { %v667_v56 = vadd.f32 %v888_v51, %v1309_v50  ;;  %v891_v59 = vadd.f32 %v890_v55, %v889_v52 }
 0x29e   :  { %v670_v60 = vadd.f32 %v891_v59, %v1309_v50  ;;  %v729_v61 = vmax.f32 %v667_v56, 0.0 }
 0x2a0   :  { %v730_v62 = vmax.f32 %v670_v60, 0.0  ;;  %v892_v63 = vpop.f32.mrb[20].mxu0 }
 0x2a1   :  { %v893_v0 = vpop.f32.mrb[21].mxu0 }
 0x2a2   :  { %v746_v1 = vpack.c.bf16 %v730_v62, %v729_v61  ;;  %v894_v2 = vadd.f32 %v893_v0, %v892_v63  ;;  %v895_v3 = vpop.f32.mrb[22].mxu0 }
 0x2a3   :  { %v896_v4 = vpop.f32.mrb[23].mxu0 }
 0x2a4   :  { %v675_v5 = vadd.f32 %v894_v2, %v1309_v50  ;;  %v897_v6 = vadd.f32 %v896_v4, %v895_v3  ;;  %964 = vmatpush3.bf16.xpose.msra.mxu1 %v746_v1 }
 0x2a5   :  { %965 = vmatprep.subr.bf16.mxu1 %v1034_v48 }
 0x2a6   :  { %v678_v7 = vadd.f32 %v897_v6, %v1309_v50  ;;  %v731_v8 = vmax.f32 %v675_v5, 0.0 }
 0x2a8   :  { %v732_v9 = vmax.f32 %v678_v7, 0.0  ;;  %v898_v10 = vpop.f32.mrb[24].mxu0 }
 0x2a9   :  { %v899_v11 = vpop.f32.mrb[25].mxu0 }
 0x2aa   :  { %v747_v12 = vpack.c.bf16 %v732_v9, %v731_v8  ;;  %v900_v13 = vadd.f32 %v899_v11, %v898_v10  ;;  %v901_v14 = vpop.f32.mrb[26].mxu0 }
 0x2ab   :  { %v902_v15 = vpop.f32.mrb[27].mxu0 }
 0x2ac   :  { %v683_v16 = vadd.f32 %v900_v13, %v1309_v50  ;;  %v903_v17 = vadd.f32 %v902_v15, %v901_v14  ;;  %966 = vmatpush3.bf16.xpose.msra.mxu1 %v747_v12 }
 0x2ad   :  { %967 = vmatprep.subr.bf16.mxu1 %v1034_v48 }
 0x2ae   :  { %v686_v18 = vadd.f32 %v903_v17, %v1309_v50  ;;  %v733_v19 = vmax.f32 %v683_v16, 0.0  ;;  %v745_v17 = vld [vmem:[%s1350_s7] sm:$0x1] }
 0x2b0   :  { %v734_v20 = vmax.f32 %v686_v18, 0.0  ;;  %v904_v21 = vpop.f32.mrb[28].mxu0  ;;  %v758_v18 = vpop.permute.xlu0 %757 }
 0x2b1   :  { %v905_v22 = vpop.f32.mrb[29].mxu0 }
 0x2b2   :  { %v748_v23 = vpack.c.bf16 %v734_v20, %v733_v19  ;;  %v906_v24 = vadd.f32 %v905_v22, %v904_v21  ;;  %v907_v25 = vpop.f32.mrb[30].mxu0  ;;  %v763_v19 = vrot.slane %v758_v18, %v248_v54 }
 0x2b3   :  { %v908_v26 = vpop.f32.mrb[31].mxu0 }
 0x2b4   :  { %v691_v27 = vadd.f32 %v906_v24, %v1309_v50  ;;  %v909_v28 = vadd.f32 %v908_v26, %v907_v25  ;;  %968 = vmatpush3.bf16.xpose.msra.mxu1 %v748_v23 }
 0x2b5   :  { %969 = vmatprep.subr.bf16.mxu1 %v1034_v48 }
 0x2b6   :  { %v694_v29 = vadd.f32 %v909_v28, %v1309_v50  ;;  %v735_v30 = vmax.f32 %v691_v27, 0.0 }
 0x2b8   :  { %v736_v31 = vmax.f32 %v694_v29, 0.0  ;;  %v910_v32 = vpop.f32.mrb[32].mxu0 }
 0x2b9   :  { %v911_v33 = vpop.f32.mrb[33].mxu0 }
 0x2ba   :  { %v749_v34 = vpack.c.bf16 %v736_v31, %v735_v30  ;;  %v912_v35 = vadd.f32 %v911_v33, %v910_v32  ;;  %v913_v36 = vpop.f32.mrb[34].mxu0 }
 0x2bb   :  { %v914_v37 = vpop.f32.mrb[35].mxu0 }
 0x2bc   :  { %v699_v38 = vadd.f32 %v912_v35, %v1309_v50  ;;  %v915_v39 = vadd.f32 %v914_v37, %v913_v36  ;;  %970 = vmatpush3.bf16.xpose.msra.mxu1 %v749_v34 }
 0x2bd   :  { %971 = vmatprep.subr.bf16.mxu1 %v1034_v48 }
 0x2be   :  { %v702_v40 = vadd.f32 %v915_v39, %v1309_v50  ;;  %v737_v41 = vmax.f32 %v699_v38, 0.0 }
 0x2c0   :  { %v738_v43 = vmax.f32 %v702_v40, 0.0  ;;  %v916_v44 = vpop.f32.mrb[36].mxu0 }
 0x2c1   :  { %v917_v45 = vpop.f32.mrb[37].mxu0 }
 0x2c2   :  { %v750_v46 = vpack.c.bf16 %v738_v43, %v737_v41  ;;  %v918_v47 = vadd.f32 %v917_v45, %v916_v44  ;;  %v919_v57 = vpop.f32.mrb[38].mxu0 }
 0x2c3   :  { %v920_v58 = vpop.f32.mrb[39].mxu0 }
 0x2c4   :  { %v707_v49 = vadd.f32 %v918_v47, %v1309_v50  ;;  %v921_v42 = vadd.f32 %v920_v58, %v919_v57  ;;  %972 = vmatpush3.bf16.xpose.msra.mxu1 %v750_v46 }
 0x2c5   :  { %973 = vmatprep.subr.bf16.mxu1 %v1034_v48 }
 0x2c6   :  { %v710_v51 = vadd.f32 %v921_v42, %v1309_v50  ;;  %v739_v52 = vmax.f32 %v707_v49, 0.0 }
 0x2c8   :  { %v740_v55 = vmax.f32 %v710_v51, 0.0  ;;  %v922_v56 = vpop.f32.mrb[40].mxu0 }
 0x2c9   :  { %v923_v59 = vpop.f32.mrb[41].mxu0 }
 0x2ca   :  { %v751_v60 = vpack.c.bf16 %v740_v55, %v739_v52  ;;  %v924_v61 = vadd.f32 %v923_v59, %v922_v56  ;;  %v925_v62 = vpop.f32.mrb[42].mxu0 }
 0x2cb   :  { %v926_v63 = vpop.f32.mrb[43].mxu0 }
 0x2cc   :  { %v715_v0 = vadd.f32 %v924_v61, %v1309_v50  ;;  %v927_v1 = vadd.f32 %v926_v63, %v925_v62  ;;  %974 = vmatpush3.bf16.xpose.msra.mxu1 %v751_v60 }
 0x2cd   :  { %975 = vmatprep.subr.bf16.mxu1 %v1034_v48 }
 0x2ce   :  { %v718_v2 = vadd.f32 %v927_v1, %v1309_v50  ;;  %v741_v3 = vmax.f32 %v715_v0, 0.0 }
 0x2d0   :  { %v742_v4 = vmax.f32 %v718_v2, 0.0  ;;  %v928_v5 = vpop.f32.mrb[44].mxu0 }
 0x2d1   :  { %v929_v6 = vpop.f32.mrb[45].mxu0 }
 0x2d2   :  { %v752_v7 = vpack.c.bf16 %v742_v4, %v741_v3  ;;  %v930_v8 = vadd.f32 %v929_v6, %v928_v5  ;;  %v931_v9 = vpop.f32.mrb[46].mxu0 }
 0x2d3   :  { %v932_v10 = vpop.f32.mrb[47].mxu0 }
 0x2d4   :  { %v723_v11 = vadd.f32 %v930_v8, %v1309_v50  ;;  %v933_v12 = vadd.f32 %v932_v10, %v931_v9  ;;  %976 = vmatpush3.bf16.xpose.msra.mxu1 %v752_v7 }
 0x2d5   :  { %977 = vmatprep.subr.bf16.mxu1 %v1034_v48 }
 0x2d6   :  { %v726_v13 = vadd.f32 %v933_v12, %v1309_v50  ;;  %v743_v14 = vmax.f32 %v723_v11, 0.0 }
 0x2d8   :  { %v744_v15 = vmax.f32 %v726_v13, 0.0 }
 0x2da   :  { %v753_v16 = vpack.c.bf16 %v744_v15, %v743_v14 }
 0x2dc   :  { %978 = vmatpush3.bf16.xpose.msra.mxu1 %v753_v16 }
 0x2e3   :  { %980 = vmatmul.mubr.bf16.vlgmr.msra.gmra.mrb[32].mxu1 %v745_v17 }
 0x3b6   :  { %v798_v20 = vpop.f32.mrb[32].mxu1 }
 0x3b7   :  { %v799_v21 = vadd.f32 %v798_v20, %v763_v19  ;;  %v981_v22 = vpop.f32.mrb[33].mxu1 }
 0x3b8   :  { %v801_v23 = vpop.f32.mrb[34].mxu1 }
 0x3b9   :  { %v859_v48 = vmul.f32 -1.442695, %v799_v21  ;;  %v982_v24 = vpop.f32.mrb[35].mxu1 }
 0x3bb   :  { %1029 = vpow2.f32 %v859_v48 }
 0x3c5   :  { %v1030_v50 = vpop.eup %1029 }
 0x3c6   :  { %v807_v25 = vadd.f32 1.0, %v1030_v50 }
 0x3c8   :  { %1031 = vrcp.f32 %v807_v25 }
 0x3d2   :  { %v1032_v26 = vpop.eup %1031 }
 0x3d3   :  { %810 = vst [vmem:[%s1351_s9] sm:$0x1] %v1032_v26 }

</bundles_post_ra>
